<compile_context>
chip_gen: v7x
topology: tpu7x:2x2x1
jax: 0.10.0
libtpu: 0.0.40
codegen_flags: <defaults>
</compile_context>

<pallas_src>
import functools

import jax
import jax.numpy as jnp
from jax.experimental import pallas as pl
from jax.experimental.pallas import tpu as pltpu


def _head_kernel(cls_ref, xv_ref, wd_ref, bd_ref, woh_ref, wov_ref, bo_ref, o_ref):
    # cls_ref : (tb, H)  CLS-token activations (sliced once in the wrapper)
    # xv_ref  : (tb, V)  external features
    # wd_ref  : (H, H)   dense weight, (in, out) layout
    # bd_ref  : (1, H)   dense bias (f32)
    # woh_ref : (H, L)   out_proj weight rows acting on dense(x)
    # wov_ref : (V, L)   out_proj weight rows acting on external features
    # bo_ref  : (1, L)   out_proj bias (f32)
    # o_ref   : (tb, L)  logits
    h = jnp.dot(cls_ref[...], wd_ref[...], preferred_element_type=jnp.float32)
    h = h + bd_ref[...]
    # (no tanh in this module variant -- matches the PyTorch source)
    out = jnp.dot(h.astype(woh_ref.dtype), woh_ref[...],
                  preferred_element_type=jnp.float32)
    out = out + jnp.dot(xv_ref[...], wov_ref[...],
                        preferred_element_type=jnp.float32)
    out = out + bo_ref[...]
    o_ref[...] = out.astype(o_ref.dtype)


def prepare_head_params(params, *, compute_dtype=jnp.float32):
    """One-time parameter preprocessing (do at init time, NOT per forward).

    compute_dtype=jnp.bfloat16 halves streamed weight/activation bytes
    (recommended on v5e/v6e); f32 matches the PyTorch reference bit-closely.
    """
    H = params["dense_w"].shape[0]
    L = params["out_proj_w"].shape[0]
    wo_t = jnp.asarray(params["out_proj_w"]).T                      # (H+V, L), (in,out)
    return {
        "dense_w_t": jnp.asarray(params["dense_w"]).T.astype(compute_dtype),   # (H, H)
        "dense_b": jnp.asarray(params["dense_b"]).reshape(1, H).astype(jnp.float32),
        "out_proj_w_h": wo_t[:H, :].astype(compute_dtype),          # (H, L)
        "out_proj_w_v": wo_t[H:, :].astype(compute_dtype),          # (V, L)
        "out_proj_b": jnp.asarray(params["out_proj_b"]).reshape(1, L).astype(jnp.float32),
    }


def _choose_tb(B, block_b):
    """Batch tile: multiple of 8, <= block_b, and >= 2 grid steps when B > 8
    so ("parallel",) grid semantics can use both TensorCores on v7x."""
    if B <= 8:
        return B
    tb = min(block_b, pl.cdiv(B, 2))
    tb = max(8, (tb // 8) * 8)
    return min(tb, B)


def roberta_classification_head(features, external_features, prepared, *, block_b=512):
    """features: (B, S, H), external_features: (B, V) -> (B, num_labels) f32."""
    B, S, H = features.shape
    V = external_features.shape[-1]
    L = prepared["out_proj_b"].shape[-1]
    dt = prepared["dense_w_t"].dtype

    # CLS extraction in the wrapper: the kernel only streams (B, H) activation
    # bytes, not the full (B, S, H) features tensor (S-fold HBM saving).
    cls = features[:, 0, :].astype(dt)
    ext = external_features.astype(dt)

    tb = _choose_tb(B, block_b)
    grid = (pl.cdiv(B, tb),)

    return pl.pallas_call(
        _head_kernel,
        out_shape=jax.ShapeDtypeStruct((B, L), jnp.float32),
        grid=grid,
        in_specs=[
            pl.BlockSpec((tb, H), lambda i: (i, 0)),   # CLS activations (streamed)
            pl.BlockSpec((tb, V), lambda i: (i, 0)),   # external features (streamed)
            pl.BlockSpec((H, H), lambda i: (0, 0)),    # dense weight, VMEM-resident
            pl.BlockSpec((1, H), lambda i: (0, 0)),    # dense bias
            pl.BlockSpec((H, L), lambda i: (0, 0)),    # out_proj weight (dense rows)
            pl.BlockSpec((V, L), lambda i: (0, 0)),    # out_proj weight (external rows)
            pl.BlockSpec((1, L), lambda i: (0, 0)),    # out_proj bias
        ],
        out_specs=pl.BlockSpec((tb, L), lambda i: (i, 0)),
        compiler_params=pltpu.CompilerParams(
            dimension_semantics=("parallel",),   # v7x: shard batch blocks across both TCs
        ),
    )(cls, ext,
      prepared["dense_w_t"], prepared["dense_b"],
      prepared["out_proj_w_h"], prepared["out_proj_w_v"],
      prepared["out_proj_b"])


def _reference(features, external_features, params):
    x = features[:, 0, :]
    x = x @ params["dense_w"].T + params["dense_b"]
    x = jnp.concatenate([x, external_features], axis=-1)
    return x @ params["out_proj_w"].T + params["out_proj_b"]


if __name__ == "__main__":
    # Small config consistent with the module: hidden_size=128, value_head=8,
    # num_labels=4, batch=16, seq=4.  _choose_tb picks tb=8 -> 2-step batch grid.
    B, S, H, V, L = 16, 4, 128, 8, 4

    key = jax.random.PRNGKey(0)
    ks = jax.random.split(key, 5)
    features = jax.random.normal(ks[0], (B, S, H), dtype=jnp.float32)
    external = jax.random.normal(ks[1], (B, V), dtype=jnp.float32)

    params = {
        "dense_w": jax.random.normal(ks[2], (H, H), dtype=jnp.float32) * 0.02,
        "dense_b": jnp.zeros((H,), dtype=jnp.float32),
        "out_proj_w": jax.random.normal(ks[3], (L, H + V), dtype=jnp.float32) * 0.02,
        "out_proj_b": jax.random.normal(ks[4], (L,), dtype=jnp.float32) * 0.02,
    }

    prepared = prepare_head_params(params)     # one-time, outside the hot path
    fwd = jax.jit(functools.partial(roberta_classification_head))

    out = fwd(features, external, prepared)
    out = jax.block_until_ready(out)

    ref = _reference(features, external, params)
    assert out.shape == (B, L), out.shape
    assert jnp.allclose(out, ref, atol=1e-4, rtol=1e-4), "mismatch vs reference"
    print("KERNEL_OK")
</pallas_src>

<mosaic_0001>
module attributes {stable_mosaic.version = 11 : i64} {
  func.func @_head_kernel(%arg0: i32, %arg1: memref<8x128xf32, #tpu.memory_space<vmem>>, %arg2: memref<8x8xf32, #tpu.memory_space<vmem>>, %arg3: memref<128x128xf32, #tpu.memory_space<vmem>>, %arg4: memref<1x128xf32, #tpu.memory_space<vmem>>, %arg5: memref<128x4xf32, #tpu.memory_space<vmem>>, %arg6: memref<8x4xf32, #tpu.memory_space<vmem>>, %arg7: memref<1x4xf32, #tpu.memory_space<vmem>>, %arg8: memref<8x4xf32, #tpu.memory_space<vmem>>) attributes {dimension_semantics = [#tpu.dimension_semantics<parallel>], iteration_bounds = array<i64: 2>, scalar_prefetch = 0 : i64, scratch_operands = 0 : i64, tpu.core_type = #tpu.core_type<tc>, window_params = [{transform_indices = @transform_0, window_bounds = array<i64: 8, 128>}, {transform_indices = @transform_1, window_bounds = array<i64: 8, 8>}, {pipeline_mode = #tpu.pipeline_mode<synchronous>, transform_indices = @transform_2, window_bounds = array<i64: 128, 128>}, {pipeline_mode = #tpu.pipeline_mode<synchronous>, transform_indices = @transform_3, window_bounds = array<i64: 1, 128>}, {pipeline_mode = #tpu.pipeline_mode<synchronous>, transform_indices = @transform_4, window_bounds = array<i64: 128, 4>}, {pipeline_mode = #tpu.pipeline_mode<synchronous>, transform_indices = @transform_5, window_bounds = array<i64: 8, 4>}, {pipeline_mode = #tpu.pipeline_mode<synchronous>, transform_indices = @transform_6, window_bounds = array<i64: 1, 4>}, {transform_indices = @transform_7, window_bounds = array<i64: 8, 4>}]} {
    %c0 = arith.constant 0 : index
    %c0_0 = arith.constant 0 : index
    %0 = vector.load %arg1[%c0, %c0_0] : memref<8x128xf32, #tpu.memory_space<vmem>>, vector<8x128xf32>
    %c0_1 = arith.constant 0 : index
    %c0_2 = arith.constant 0 : index
    %1 = vector.load %arg3[%c0_1, %c0_2] : memref<128x128xf32, #tpu.memory_space<vmem>>, vector<128x128xf32>
    %cst = arith.constant dense<0.000000e+00> : vector<8x128xf32>
    %2 = tpu.matmul %0, %1, %cst {dimension_numbers = #tpu.dot_dimension_numbers<[1], [0], [0], [1], [0, 0, 1, 1], [], []>} : vector<8x128xf32>, vector<128x128xf32>, vector<8x128xf32> -> vector<8x128xf32>
    %c0_3 = arith.constant 0 : index
    %c0_4 = arith.constant 0 : index
    %3 = vector.load %arg4[%c0_3, %c0_4] : memref<1x128xf32, #tpu.memory_space<vmem>>, vector<1x128xf32>
    %4 = vector.broadcast %3 : vector<1x128xf32> to vector<8x128xf32>
    %5 = arith.addf %2, %4 : vector<8x128xf32>
    %c0_5 = arith.constant 0 : index
    %c0_6 = arith.constant 0 : index
    %6 = vector.load %arg5[%c0_5, %c0_6] : memref<128x4xf32, #tpu.memory_space<vmem>>, vector<128x4xf32>
    %cst_7 = arith.constant dense<0.000000e+00> : vector<8x4xf32>
    %7 = tpu.matmul %5, %6, %cst_7 {dimension_numbers = #tpu.dot_dimension_numbers<[1], [0], [0], [1], [0, 0, 1, 1], [], []>} : vector<8x128xf32>, vector<128x4xf32>, vector<8x4xf32> -> vector<8x4xf32>
    %c0_8 = arith.constant 0 : index
    %c0_9 = arith.constant 0 : index
    %8 = vector.load %arg2[%c0_8, %c0_9] : memref<8x8xf32, #tpu.memory_space<vmem>>, vector<8x8xf32>
    %c0_10 = arith.constant 0 : index
    %c0_11 = arith.constant 0 : index
    %9 = vector.load %arg6[%c0_10, %c0_11] : memref<8x4xf32, #tpu.memory_space<vmem>>, vector<8x4xf32>
    %cst_12 = arith.constant dense<0.000000e+00> : vector<8x4xf32>
    %10 = tpu.matmul %8, %9, %cst_12 {dimension_numbers = #tpu.dot_dimension_numbers<[1], [0], [0], [1], [0, 0, 1, 1], [], []>} : vector<8x8xf32>, vector<8x4xf32>, vector<8x4xf32> -> vector<8x4xf32>
    %11 = arith.addf %7, %10 : vector<8x4xf32>
    %c0_13 = arith.constant 0 : index
    %c0_14 = arith.constant 0 : index
    %12 = vector.load %arg7[%c0_13, %c0_14] : memref<1x4xf32, #tpu.memory_space<vmem>>, vector<1x4xf32>
    %13 = vector.broadcast %12 : vector<1x4xf32> to vector<8x4xf32>
    %14 = arith.addf %11, %13 : vector<8x4xf32>
    %c0_15 = arith.constant 0 : index
    %c0_16 = arith.constant 0 : index
    %15 = vector.load %arg8[%c0_15, %c0_16] : memref<8x4xf32, #tpu.memory_space<vmem>>, vector<8x4xf32>
    tpu.vector_store %arg8[%c0_15, %c0_16], %14 {strides = array<i32>} : memref<8x4xf32, #tpu.memory_space<vmem>>, vector<8x4xf32>,
    return
  }
  func.func @transform_0(%arg0: i32) -> (i32, i32) {
    %c0_i32 = arith.constant 0 : i32
    %c0_i32_0 = arith.constant 0 : i32
    return %arg0, %c0_i32 : i32, i32
  }
  func.func @transform_1(%arg0: i32) -> (i32, i32) {
    %c0_i32 = arith.constant 0 : i32
    %c0_i32_0 = arith.constant 0 : i32
    return %arg0, %c0_i32 : i32, i32
  }
  func.func @transform_2(%arg0: i32) -> (i32, i32) {
    %c0_i32 = arith.constant 0 : i32
    %c0_i32_0 = arith.constant 0 : i32
    %c0_i32_1 = arith.constant 0 : i32
    return %c0_i32, %c0_i32_0 : i32, i32
  }
  func.func @transform_3(%arg0: i32) -> (i32, i32) {
    %c0_i32 = arith.constant 0 : i32
    %c0_i32_0 = arith.constant 0 : i32
    %c0_i32_1 = arith.constant 0 : i32
    return %c0_i32, %c0_i32_0 : i32, i32
  }
  func.func @transform_4(%arg0: i32) -> (i32, i32) {
    %c0_i32 = arith.constant 0 : i32
    %c0_i32_0 = arith.constant 0 : i32
    %c0_i32_1 = arith.constant 0 : i32
    return %c0_i32, %c0_i32_0 : i32, i32
  }
  func.func @transform_5(%arg0: i32) -> (i32, i32) {
    %c0_i32 = arith.constant 0 : i32
    %c0_i32_0 = arith.constant 0 : i32
    %c0_i32_1 = arith.constant 0 : i32
    return %c0_i32, %c0_i32_0 : i32, i32
  }
  func.func @transform_6(%arg0: i32) -> (i32, i32) {
    %c0_i32 = arith.constant 0 : i32
    %c0_i32_0 = arith.constant 0 : i32
    %c0_i32_1 = arith.constant 0 : i32
    return %c0_i32, %c0_i32_0 : i32, i32
  }
  func.func @transform_7(%arg0: i32) -> (i32, i32) {
    %c0_i32 = arith.constant 0 : i32
    %c0_i32_0 = arith.constant 0 : i32
    return %arg0, %c0_i32 : i32, i32
  }
}

</mosaic_0001>

<bundles_post_ra>
// kernel: roberta_classification_head.1
= control target key start
LH: loop header
LB: loop body
LE: loop exit
PB: predicated region body
PF: predicated region fallthrough
CT: control target
= control target key end

     0   :  { %s856_s24 = smov 0   ;;  %s1005_s0 = inlined_call_operand.vmem [shape: f32[16,128], index: 0, kind: input, shape index: {}]   ;;  %s1006_s1 = inlined_call_operand.vmem [shape: f32[16,8], index: 1, kind: input, shape index: {}]   ;;  %s1007_s2 = inlined_call_operand.vmem [shape: f32[128,128], index: 2, kind: input, shape index: {}]   ;;  %s1008_s3 = inlined_call_operand.vmem [shape: f32[1,128], index: 3, kind: input, shape index: {}]   ;;  %s1009_s4 = inlined_call_operand.vmem [shape: f32[128,4], index: 4, kind: input, shape index: {}]   ;;  %s1010_s5 = inlined_call_operand.vmem [shape: f32[8,4], index: 5, kind: input, shape index: {}]   ;;  %s1011_s6 = inlined_call_operand.vmem [shape: f32[1,4], index: 6, kind: input, shape index: {}]   ;;  %s1012_s7 = inlined_call_operand.vmem [shape: f32[16,4], index: 7, kind: output, shape index: {}]  }
   0x1 LB: > { %s622_s25 = sadd.s32 4294967295, %s811_s24   ;;  %p626_p0 = scmp.ge.s32.totalorder %s811_s24, 1  ;;  %s811_s24 = sphi %s856_s24, %s17_s24  }
   0x2   : > { %p245_p1 = scmp.lt.s32.totalorder %s811_s24, 3 }
   0x4   : > { %p246_p2 = pnand %p626_p0, %p245_p1 }
   0x5   : > { %v292_v0 = vld [vmem:[%s1007_s2] sm:$0xff] (!%p246_p2)  ;;  %v293_v1 = vld [vmem:[%s1007_s2 + $0x8] sm:$0xff] (!%p246_p2)  ;;  %v294_v2 = vld [vmem:[%s1007_s2 + $0x10] sm:$0xff] (!%p246_p2)  ;;  %v813_v3 = vmov (!%p246_p2), 0.0|0.0   ;;  %vm814_vm0 = vmmov (!%p246_p2), 0   ;;  %v815_v6 = vmov (!%p246_p2), 0.0  }
   0x6   : > { %249 = sbr.rel (%p246_p2) target bundleno = 470 (0x1d6), region = 48  ;;  %746 = vmatprep.subr.bf16.mxu0 (!%p246_p2), %v813_v3  ;;  %v747_v4 = vpack.c.bf16 (!%p246_p2), %v293_v1, %v292_v0  ;;  %v295_v5 = vld [vmem:[%s1007_s2 + $0x18] sm:$0xff] (!%p246_p2)  ;;  %703 = vmatprep.mubr.msk.f32.mxu0 (!%p246_p2), %vm814_vm0, %v815_v6  ;;  %p279_p3 = scmp.lt.s32.totalorder (!%p246_p2), %s622_s25, 1  ;;  %v296_v8 = vld [vmem:[%s1007_s2 + $0x20] sm:$0xff] (!%p246_p2)  ;;  %v297_v9 = vld [vmem:[%s1007_s2 + $0x28] sm:$0xff] (!%p246_p2)  ;;  %vm403_vm1 = vcmask (!%p246_p2), 64512  }
   0x7   : > { %706 = vmatprep.subr.mxu1 (!%p246_p2), %v815_v6  ;;  %708 = vmatprep.mubr.msk.f32.mxu1 (!%p246_p2), %vm814_vm0, %v815_v6  ;;  %v750_v7 = vpack.c.bf16 (!%p246_p2), %v295_v5, %v294_v2  ;;  %v402_v10 = vld [vmem:[%s1010_s5] sm:$0xff] (!%p246_p2)  ;;  %v386_v12 = vld [vmem:[%s1009_s4 + $0x8] sm:$0xff] (!%p246_p2)  ;;  %v753_v13 = vpack.c.bf16 (!%p246_p2), %v297_v9, %v296_v8  ;;  %v387_v15 = vld [vmem:[%s1009_s4 + $0x10] sm:$0xff] (!%p246_p2)  ;;  %vm555_vm2 = vcmask (!%p246_p2), 31744  }
   0x8   : > { %748 = vmatpush3.bf16.msra.mxu0 (!%p246_p2), %v747_v4  ;;  %v385_v11 = vld [vmem:[%s1009_s4] sm:$0xff] (!%p246_p2)  ;;  %707 = vmatpush3.msra.mxu1 (!%p246_p2), %v402_v10  ;;  %v388_v16 = vld [vmem:[%s1009_s4 + $0x18] sm:$0xff] (!%p246_p2)  ;;  %v298_v17 = vld [vmem:[%s1007_s2 + $0x30] sm:$0xff] (!%p246_p2) }
   0x9   : > { %749 = vmatprep.subr.bf16.mxu0 (!%p246_p2), %v813_v3  ;;  %770 = vmatprep.subr.bf16.mxu1 (!%p246_p2), %v813_v3  ;;  %v771_v14 = vpack.c.bf16 (!%p246_p2), %v386_v12, %v385_v11  ;;  %v299_v18 = vld [vmem:[%s1007_s2 + $0x38] sm:$0xff] (!%p246_p2)  ;;  %v774_v20 = vpack.c.bf16 (!%p246_p2), %v388_v16, %v387_v15  ;;  %v389_v22 = vld [vmem:[%s1009_s4 + $0x20] sm:$0xff] (!%p246_p2)  ;;  %v390_v23 = vld [vmem:[%s1009_s4 + $0x28] sm:$0xff] (!%p246_p2) }
   0xa   : > { %v756_v21 = vpack.c.bf16 (!%p246_p2), %v299_v18, %v298_v17  ;;  %v300_v24 = vld [vmem:[%s1007_s2 + $0x40] sm:$0xff] (!%p246_p2)  ;;  %v301_v25 = vld [vmem:[%s1007_s2 + $0x48] sm:$0xff] (!%p246_p2)  ;;  %v777_v26 = vpack.c.bf16 (!%p246_p2), %v390_v23, %v389_v22  ;;  %v391_v28 = vld [vmem:[%s1009_s4 + $0x30] sm:$0xff] (!%p246_p2) }
   0xb   : > { %v759_v27 = vpack.c.bf16 (!%p246_p2), %v301_v25, %v300_v24  ;;  %v392_v29 = vld [vmem:[%s1009_s4 + $0x38] sm:$0xff] (!%p246_p2)  ;;  %v302_v30 = vld [vmem:[%s1007_s2 + $0x50] sm:$0xff] (!%p246_p2)  ;;  %v393_v34 = vld [vmem:[%s1009_s4 + $0x40] sm:$0xff] (!%p246_p2) }
   0xc   : > { %751 = vmatpush3.bf16.msra.mxu0 (!%p246_p2), %v750_v7  ;;  %v303_v31 = vld [vmem:[%s1007_s2 + $0x58] sm:$0xff] (!%p246_p2)  ;;  %v780_v32 = vpack.c.bf16 (!%p246_p2), %v392_v29, %v391_v28  ;;  %v394_v35 = vld [vmem:[%s1009_s4 + $0x48] sm:$0xff] (!%p246_p2)  ;;  %v304_v36 = vld [vmem:[%s1007_s2 + $0x60] sm:$0xff] (!%p246_p2) }
   0xd   : > { %s1014_s25 = smov (!%p279_p3, %s622_s25), 1  ;;  %752 = vmatprep.subr.bf16.mxu0 %v813_v3  ;;  %v762_v33 = vpack.c.bf16 %v303_v31, %v302_v30  ;;  %v305_v37 = vld [vmem:[%s1007_s2 + $0x68] sm:$0xff]  ;;  %v783_v38 = vpack.c.bf16 %v394_v35, %v393_v34  ;;  %v395_v40 = vld [vmem:[%s1009_s4 + $0x50] sm:$0xff]  ;;  %v396_v41 = vld [vmem:[%s1009_s4 + $0x58] sm:$0xff] }
   0xe   : > { %s892_s19 = sshll.u32 %s1014_s25, 3  ;;  %v765_v39 = vpack.c.bf16 %v305_v37, %v304_v36  ;;  %v306_v42 = vld [vmem:[%s1007_s2 + $0x70] sm:$0xff]  ;;  %v307_v43 = vld [vmem:[%s1007_s2 + $0x78] sm:$0xff]  ;;  %v786_v44 = vpack.c.bf16 %v396_v41, %v395_v40  ;;  %v397_v46 = vld [vmem:[%s1009_s4 + $0x60] sm:$0xff] }
   0xf   : > { %s286_s26 = scalar_lea.vmem %s1006_s1, %s892_s19  ;;  %v768_v45 = vpack.c.bf16 %v307_v43, %v306_v42  ;;  %v398_v47 = vld [vmem:[%s1009_s4 + $0x68] sm:$0xff]  ;;  %s282_s30 = scalar_lea.vmem %s1005_s0, %s892_s19  ;;  %v399_v50 = vld [vmem:[%s1009_s4 + $0x70] sm:$0xff]  ;;  %v400_v51 = vld [vmem:[%s1009_s4 + $0x78] sm:$0xff] }
  0x10   : > { %v401_v19 = vld [vmem:[%s286_s26] sm:$0xff]  ;;  %754 = vmatpush3.bf16.msra.mxu0 %v753_v13  ;;  %v789_v48 = vpack.c.bf16 %v398_v47, %v397_v46  ;;  %v792_v52 = vpack.c.bf16 %v400_v51, %v399_v50  ;;  %s290_s18 = scalar_lea.vmem %s1012_s7, %s892_s19 }
  0x11   : > { %709 = vmatmul.mubr.msk.f32.vlgmr.msra.gmra.mrb[0].mxu1 %vm403_vm1, %v401_v19  ;;  %755 = vmatprep.subr.bf16.mxu0 %v813_v3  ;;  %v291_v49 = vld [vmem:[%s282_s30] sm:$0xff] }
  0x12   : > { %772 = vmatpush3.bf16.msra.mxu1 %v771_v14  ;;  %743 = vmatprep.mubr.msk.f32.mxu1 %vm814_vm0, %v815_v6  ;;  %v630_v55 = vld [vmem:[%s1008_s3] ss:$0 sm:$0xff] }
  0x13   : > { %773 = vmatprep.subr.bf16.mxu1 %v813_v3  ;;  %v632_v60 = vld [vmem:[%s1011_s6] ss:$0 sm:$0xff] }
  0x14   : > { %757 = vmatpush3.bf16.msra.mxu0 %v756_v21 }
  0x15   : > { %758 = vmatprep.subr.bf16.mxu0 %v813_v3 }
  0x16   : > { %775 = vmatpush3.bf16.msra.mxu1 %v774_v20 }
  0x17   : > { %776 = vmatprep.subr.bf16.mxu1 %v813_v3 }
  0x18   : > { %760 = vmatpush3.bf16.msra.mxu0 %v759_v27 }
  0x19   : > { %761 = vmatprep.subr.bf16.mxu0 %v813_v3 }
  0x1a   : > { %778 = vmatpush3.bf16.msra.mxu1 %v777_v26 }
  0x1b   : > { %779 = vmatprep.subr.bf16.mxu1 %v813_v3 }
  0x1c   : > { %763 = vmatpush3.bf16.msra.mxu0 %v762_v33 }
  0x1d   : > { %764 = vmatprep.subr.bf16.mxu0 %v813_v3 }
  0x1e   : > { %781 = vmatpush3.bf16.msra.mxu1 %v780_v32 }
  0x1f   : > { %782 = vmatprep.subr.bf16.mxu1 %v813_v3 }
  0x20   : > { %766 = vmatpush3.bf16.msra.mxu0 %v765_v39 }
  0x21   : > { %767 = vmatprep.subr.bf16.mxu0 %v813_v3 }
  0x22   : > { %784 = vmatpush3.bf16.msra.mxu1 %v783_v38 }
  0x23   : > { %785 = vmatprep.subr.bf16.mxu1 %v813_v3 }
  0x24   : > { %769 = vmatpush3.bf16.msra.mxu0 %v768_v45 }
  0x26   : > { %787 = vmatpush3.bf16.msra.mxu1 %v786_v44 }
  0x27   : > { %788 = vmatprep.subr.bf16.mxu1 %v813_v3  ;;  %704 = vmatmul.mubr.f32.vlgmr.msra.gmra.mrb[0].mxu0 %v291_v49 }
  0x2a   : > { %790 = vmatpush3.bf16.msra.mxu1 %v789_v48 }
  0x2b   : > { %791 = vmatprep.subr.bf16.mxu1 %v813_v3 }
  0x2e   : > { %793 = vmatpush3.bf16.msra.mxu1 %v792_v52 }
  0xe4   : > { %v473_v53 = vpop.f32.mrb[0].mxu1 }
  0xe5   : > { %v710_v54 = vpop.f32.mrb[1].mxu1 }
  0xfa   : > { %v381_v56 = vpop.f32.mrb[0].mxu0 }
  0xfb   : > { %v382_v57 = vadd.f32 %v630_v55, %v381_v56  ;;  %v705_v58 = vpop.f32.mrb[1].mxu0 }
  0xfd   : > { %744 = vmatmul.mubr.f32.vlgmr.msra.gmra.mrb[2].mxu1 %v382_v57 }
 0x1d0   : > { %v543_v59 = vpop.f32.mrb[2].mxu1 }
 0x1d1   : > { %v544_v61 = vadd.f32 %v543_v59, %v473_v53  ;;  %v745_v62 = vpop.f32.mrb[3].mxu1 }
 0x1d3   : > { %v554_v63 = vadd.f32 %v632_v60, %v544_v61 }
 0x1d5   : > { %556 = vst.msk [vmem:[%s290_s18] sm:$0xff] %vm555_vm2, %v554_v63 }
 0x1d6 PF: > { %s17_s24 = sadd.s32 1, %s811_s24  }
 0x1d7   : > { %p14_p4 = scmp.ge.s32.totalorder %s17_s24, 4  }
 0x1d9   :  { %16 = sbr.rel (!%p14_p4) target bundleno = 1 (0x1), region = 81 }

</bundles_post_ra>
